<compile_context>
chip_gen: v5e
topology: v5e:2x2
jax: 0.10.0
libtpu: 0.0.40
codegen_flags: <defaults>
</compile_context>

<pallas_src>
import functools
import math

import jax
import jax.numpy as jnp
from jax.experimental import pallas as pl
from jax.experimental.pallas import tpu as pltpu

LOG_STD_MIN = -20.0
LOG_STD_MAX = 2.0
_HALF_LOG_2PI = 0.5 * math.log(2.0 * math.pi)
_LOG2 = math.log(2.0)


def _softplus(t):
    # numerically stable softplus, matches F.softplus
    return jnp.maximum(t, 0.0) + jnp.log1p(jnp.exp(-jnp.abs(t)))


def _tanh_gaussian_kernel(*refs, no_tanh: bool, deterministic: bool):
    if deterministic:
        mean_ref, log_std_ref, ones_ref, act_ref, lp_ref = refs
        eps = None
    else:
        mean_ref, log_std_ref, eps_ref, ones_ref, act_ref, lp_ref = refs
        eps = eps_ref[...].astype(jnp.float32)

    # All log-prob math in f32 even for bf16 I/O.
    mean = mean_ref[...].astype(jnp.float32)
    log_std = jnp.clip(log_std_ref[...].astype(jnp.float32),
                       LOG_STD_MIN, LOG_STD_MAX)

    if deterministic:
        x = mean                                   # pre-tanh value
        normal_lp = -log_std - _HALF_LOG_2PI       # z == 0 exactly
    else:
        std = jnp.exp(log_std)
        x = mean + std * eps                       # rsample pre-tanh value
        normal_lp = -0.5 * eps * eps - log_std - _HALF_LOG_2PI   # z == eps

    if no_tanh:
        action = x
        lp = normal_lp
    else:
        action = jnp.tanh(x)
        # Cached pre-tanh value is x itself (TanhTransform cache hit); using x
        # directly also avoids the atanh(tanh(.)) inf at saturated means.
        log_det = 2.0 * (_LOG2 - x - _softplus(-2.0 * x))
        lp = normal_lp - log_det

    act_ref[...] = action.astype(act_ref.dtype)

    if lp_ref.shape[-1] == 1:
        # Un-packed fallback layout: plain lane reduction.
        lp_ref[...] = jnp.sum(lp, axis=-1, keepdims=True).astype(lp_ref.dtype)
    else:
        # Packed layout: grouped lane reduction via block-diagonal ones matmul
        # on the MXU (each output column g sums lanes [g*A, (g+1)*A)).
        lp_ref[...] = jnp.dot(lp, ones_ref[...],
                              preferred_element_type=jnp.float32
                              ).astype(lp_ref.dtype)


def reparameterized_tanh_gaussian(mean, log_std, eps=None, *,
                                  no_tanh: bool = False,
                                  deterministic: bool = False,
                                  block_rows: int = 1024):
    """Single-pass elementwise + grouped lane-reduction kernel.

    eps are the standard-normal draws used by rsample (supplied from plain JAX
    RNG -- the distribution sampling itself is not drawn in-kernel).
    Returns (action [B, A] in mean.dtype, log_prob [B] in f32).
    """
    B, A = mean.shape
    if not deterministic:
        if eps is None:
            raise ValueError("eps is required unless deterministic=True")
        assert eps.shape == (B, A)

    # Lane-dense packing: put G = 128 // A consecutive batch rows into one
    # 128-lane row (a pure row-major reshape, free in XLA).
    if A < 128 and 128 % A == 0 and B % (128 // A) == 0:
        G = 128 // A
    else:
        G = 1
    L = G * A
    rows = B // G

    # Row tiling: full problem if it fits, else <=block_rows (multiple of 8/16).
    br = rows if rows <= block_rows else max(16, (block_rows // 16) * 16)
    grid = (pl.cdiv(rows, br),)

    # Block-diagonal ones matrix (L, G) for the grouped per-row reduction.
    lane_group = jnp.arange(L, dtype=jnp.int32) // A
    ones_blk = (lane_group[:, None] == jnp.arange(G, dtype=jnp.int32)[None, :]
                ).astype(jnp.float32)

    data_spec = pl.BlockSpec((br, L), lambda i: (i, 0))
    ones_spec = pl.BlockSpec((L, G), lambda i: (0, 0))

    inputs = [mean.reshape(rows, L), log_std.reshape(rows, L)]
    in_specs = [data_spec, data_spec]
    if not deterministic:
        inputs.append(eps.reshape(rows, L))
        in_specs.append(data_spec)
    inputs.append(ones_blk)
    in_specs.append(ones_spec)

    kernel = functools.partial(_tanh_gaussian_kernel,
                               no_tanh=no_tanh, deterministic=deterministic)

    action_p, lp_p = pl.pallas_call(
        kernel,
        grid=grid,
        in_specs=in_specs,
        out_specs=(
            pl.BlockSpec((br, L), lambda i: (i, 0)),   # action (packed)
            pl.BlockSpec((br, G), lambda i: (i, 0)),   # log_prob (packed groups)
        ),
        out_shape=(
            jax.ShapeDtypeStruct((rows, L), mean.dtype),
            jax.ShapeDtypeStruct((rows, G), jnp.float32),
        ),
        compiler_params=pltpu.CompilerParams(
            dimension_semantics=("parallel",)),
    )(*inputs)

    return action_p.reshape(B, A), lp_p.reshape(B)


def _reference(mean, log_std, eps, *, no_tanh=False, deterministic=False):
    """Pure-JAX reference (same math as torch's TransformedDistribution path)."""
    ls = jnp.clip(log_std, LOG_STD_MIN, LOG_STD_MAX)
    std = jnp.exp(ls)
    x = mean if deterministic else mean + std * eps
    z = (x - mean) / std
    normal_lp = -0.5 * z * z - ls - _HALF_LOG_2PI
    if no_tanh:
        action = x
        lp = normal_lp
    else:
        action = jnp.tanh(x)
        lp = normal_lp - 2.0 * (_LOG2 - x - jax.nn.softplus(-2.0 * x))
    return action, jnp.sum(lp, axis=-1)


if __name__ == "__main__":
    # The module has no learnable parameters; inputs are (mean, log_std).
    key = jax.random.PRNGKey(0)
    k_mean, k_std, k_eps = jax.random.split(key, 3)

    B, A = 8, 32  # batch, action_dim
    mean = jax.random.normal(k_mean, (B, A), dtype=jnp.float32)
    log_std = 0.5 * jax.random.normal(k_std, (B, A), dtype=jnp.float32) - 1.0
    eps = jax.random.normal(k_eps, (B, A), dtype=jnp.float32)  # rsample noise

    # 1) default forward: stochastic tanh path
    action, log_prob = reparameterized_tanh_gaussian(mean, log_std, eps)
    jax.block_until_ready((action, log_prob))
    ref_a, ref_lp = _reference(mean, log_std, eps)
    assert action.shape == (B, A) and log_prob.shape == (B,)
    assert jnp.allclose(action, ref_a, atol=1e-5, rtol=1e-5)
    assert jnp.allclose(log_prob, ref_lp, atol=1e-4, rtol=1e-4)

    # 2) deterministic tanh path
    act_d, lp_d = reparameterized_tanh_gaussian(mean, log_std, deterministic=True)
    ref_ad, ref_lpd = _reference(mean, log_std, None, deterministic=True)
    assert jnp.allclose(act_d, ref_ad, atol=1e-5, rtol=1e-5)
    assert jnp.allclose(lp_d, ref_lpd, atol=1e-4, rtol=1e-4)

    # 3) no_tanh stochastic path
    act_n, lp_n = reparameterized_tanh_gaussian(mean, log_std, eps, no_tanh=True)
    ref_an, ref_lpn = _reference(mean, log_std, eps, no_tanh=True)
    assert jnp.allclose(act_n, ref_an, atol=1e-5, rtol=1e-5)
    assert jnp.allclose(lp_n, ref_lpn, atol=1e-4, rtol=1e-4)

    # 4) larger batch exercising the tiled grid + remainder block (packed layout)
    B2 = 1040
    k1, k2, k3 = jax.random.split(jax.random.PRNGKey(1), 3)
    mean2 = jax.random.normal(k1, (B2, A), dtype=jnp.float32)
    log_std2 = 0.5 * jax.random.normal(k2, (B2, A), dtype=jnp.float32) - 1.0
    eps2 = jax.random.normal(k3, (B2, A), dtype=jnp.float32)
    a2, lp2 = reparameterized_tanh_gaussian(mean2, log_std2, eps2, block_rows=128)
    jax.block_until_ready((a2, lp2))
    ra2, rlp2 = _reference(mean2, log_std2, eps2)
    assert jnp.allclose(a2, ra2, atol=1e-5, rtol=1e-5)
    assert jnp.allclose(lp2, rlp2, atol=1e-4, rtol=1e-4)

    # 5) bf16 I/O (log-prob math stays f32 inside the kernel)
    mean_b = mean.astype(jnp.bfloat16)
    ls_b = log_std.astype(jnp.bfloat16)
    eps_b = eps.astype(jnp.bfloat16)
    a_b, lp_b = reparameterized_tanh_gaussian(mean_b, ls_b, eps_b)
    ra_b, rlp_b = _reference(mean_b.astype(jnp.float32),
                             ls_b.astype(jnp.float32),
                             eps_b.astype(jnp.float32))
    assert a_b.dtype == jnp.bfloat16
    assert jnp.allclose(a_b.astype(jnp.float32), ra_b, atol=2e-2, rtol=2e-2)
    assert jnp.allclose(lp_b, rlp_b, atol=1e-3, rtol=1e-3)

    print("KERNEL_OK")
</pallas_src>

<mosaic_0001>
module attributes {stable_mosaic.version = 11 : i64} {
  func.func @_tanh_gaussian_kernel(%arg0: i32, %arg1: memref<2x128xf32, #tpu.memory_space<vmem>>, %arg2: memref<2x128xf32, #tpu.memory_space<vmem>>, %arg3: memref<2x128xf32, #tpu.memory_space<vmem>>, %arg4: memref<128x4xf32, #tpu.memory_space<vmem>>, %arg5: memref<2x128xf32, #tpu.memory_space<vmem>>, %arg6: memref<2x4xf32, #tpu.memory_space<vmem>>) attributes {dimension_semantics = [#tpu.dimension_semantics<parallel>], iteration_bounds = array<i64: 1>, scalar_prefetch = 0 : i64, scratch_operands = 0 : i64, tpu.core_type = #tpu.core_type<tc>, window_params = [{transform_indices = @transform_0, window_bounds = array<i64: 2, 128>}, {transform_indices = @transform_1, window_bounds = array<i64: 2, 128>}, {transform_indices = @transform_2, window_bounds = array<i64: 2, 128>}, {pipeline_mode = #tpu.pipeline_mode<synchronous>, transform_indices = @transform_3, window_bounds = array<i64: 128, 4>}, {transform_indices = @transform_4, window_bounds = array<i64: 2, 128>}, {transform_indices = @transform_5, window_bounds = array<i64: 2, 4>}]} {
    %c0 = arith.constant 0 : index
    %c0_0 = arith.constant 0 : index
    %0 = vector.load %arg3[%c0, %c0_0] : memref<2x128xf32, #tpu.memory_space<vmem>>, vector<2x128xf32>
    %c0_1 = arith.constant 0 : index
    %c0_2 = arith.constant 0 : index
    %1 = vector.load %arg1[%c0_1, %c0_2] : memref<2x128xf32, #tpu.memory_space<vmem>>, vector<2x128xf32>
    %c0_3 = arith.constant 0 : index
    %c0_4 = arith.constant 0 : index
    %2 = vector.load %arg2[%c0_3, %c0_4] : memref<2x128xf32, #tpu.memory_space<vmem>>, vector<2x128xf32>
    %cst = arith.constant -2.000000e+01 : f32
    %cst_5 = arith.constant 2.000000e+00 : f32
    %3 = vector.broadcast %cst : f32 to vector<2x128xf32>
    %4 = arith.maximumf %3, %2 : vector<2x128xf32>
    %5 = vector.broadcast %cst_5 : f32 to vector<2x128xf32>
    %6 = arith.minimumf %5, %4 : vector<2x128xf32>
    %7 = math.exp %6 : vector<2x128xf32>
    %8 = arith.mulf %7, %0 : vector<2x128xf32>
    %9 = arith.addf %1, %8 : vector<2x128xf32>
    %cst_6 = arith.constant -5.000000e-01 : f32
    %10 = vector.broadcast %cst_6 : f32 to vector<2x128xf32>
    %11 = arith.mulf %10, %0 : vector<2x128xf32>
    %12 = arith.mulf %11, %0 : vector<2x128xf32>
    %13 = arith.subf %12, %6 : vector<2x128xf32>
    %cst_7 = arith.constant 0.918938517 : f32
    %14 = vector.broadcast %cst_7 : f32 to vector<2x128xf32>
    %15 = arith.subf %13, %14 : vector<2x128xf32>
    %16 = math.tanh %9 : vector<2x128xf32>
    %cst_8 = arith.constant 0.693147182 : f32
    %17 = vector.broadcast %cst_8 : f32 to vector<2x128xf32>
    %18 = arith.subf %17, %9 : vector<2x128xf32>
    %cst_9 = arith.constant -2.000000e+00 : f32
    %19 = vector.broadcast %cst_9 : f32 to vector<2x128xf32>
    %20 = arith.mulf %19, %9 : vector<2x128xf32>
    %cst_10 = arith.constant 0.000000e+00 : f32
    %21 = vector.broadcast %cst_10 : f32 to vector<2x128xf32>
    %22 = arith.maximumf %20, %21 : vector<2x128xf32>
    %23 = math.absf %20 : vector<2x128xf32>
    %cst_11 = arith.constant 0.000000e+00 : f32
    %24 = vector.broadcast %cst_11 : f32 to vector<2x128xf32>
    %25 = arith.subf %24, %23 : vector<2x128xf32>
    %26 = math.exp %25 : vector<2x128xf32>
    %27 = math.log1p %26 : vector<2x128xf32>
    %28 = arith.addf %22, %27 : vector<2x128xf32>
    %29 = arith.subf %18, %28 : vector<2x128xf32>
    %cst_12 = arith.constant 2.000000e+00 : f32
    %30 = vector.broadcast %cst_12 : f32 to vector<2x128xf32>
    %31 = arith.mulf %30, %29 : vector<2x128xf32>
    %32 = arith.subf %15, %31 : vector<2x128xf32>
    %c0_13 = arith.constant 0 : index
    %c0_14 = arith.constant 0 : index
    %33 = vector.load %arg5[%c0_13, %c0_14] : memref<2x128xf32, #tpu.memory_space<vmem>>, vector<2x128xf32>
    tpu.vector_store %arg5[%c0_13, %c0_14], %16 {strides = array<i32>} : memref<2x128xf32, #tpu.memory_space<vmem>>, vector<2x128xf32>,
    %c0_15 = arith.constant 0 : index
    %c0_16 = arith.constant 0 : index
    %34 = vector.load %arg4[%c0_15, %c0_16] : memref<128x4xf32, #tpu.memory_space<vmem>>, vector<128x4xf32>
    %cst_17 = arith.constant dense<0.000000e+00> : vector<2x4xf32>
    %35 = tpu.matmul %32, %34, %cst_17 {dimension_numbers = #tpu.dot_dimension_numbers<[1], [0], [0], [1], [0, 0, 1, 1], [], []>} : vector<2x128xf32>, vector<128x4xf32>, vector<2x4xf32> -> vector<2x4xf32>
    %c0_18 = arith.constant 0 : index
    %c0_19 = arith.constant 0 : index
    %36 = vector.load %arg6[%c0_18, %c0_19] : memref<2x4xf32, #tpu.memory_space<vmem>>, vector<2x4xf32>
    tpu.vector_store %arg6[%c0_18, %c0_19], %35 {strides = array<i32>} : memref<2x4xf32, #tpu.memory_space<vmem>>, vector<2x4xf32>,
    return
  }
  func.func @transform_0(%arg0: i32) -> (i32, i32) {
    %c0_i32 = arith.constant 0 : i32
    %c0_i32_0 = arith.constant 0 : i32
    return %arg0, %c0_i32 : i32, i32
  }
  func.func @transform_1(%arg0: i32) -> (i32, i32) {
    %c0_i32 = arith.constant 0 : i32
    %c0_i32_0 = arith.constant 0 : i32
    return %arg0, %c0_i32 : i32, i32
  }
  func.func @transform_2(%arg0: i32) -> (i32, i32) {
    %c0_i32 = arith.constant 0 : i32
    %c0_i32_0 = arith.constant 0 : i32
    return %arg0, %c0_i32 : i32, i32
  }
  func.func @transform_3(%arg0: i32) -> (i32, i32) {
    %c0_i32 = arith.constant 0 : i32
    %c0_i32_0 = arith.constant 0 : i32
    %c0_i32_1 = arith.constant 0 : i32
    return %c0_i32, %c0_i32_0 : i32, i32
  }
  func.func @transform_4(%arg0: i32) -> (i32, i32) {
    %c0_i32 = arith.constant 0 : i32
    %c0_i32_0 = arith.constant 0 : i32
    return %arg0, %c0_i32 : i32, i32
  }
  func.func @transform_5(%arg0: i32) -> (i32, i32) {
    %c0_i32 = arith.constant 0 : i32
    %c0_i32_0 = arith.constant 0 : i32
    return %arg0, %c0_i32 : i32, i32
  }
}

</mosaic_0001>

<bundles_post_ra>
// kernel: tpu_custom_call.1
= control target key start
LH: loop header
LB: loop body
LE: loop exit
PB: predicated region body
PF: predicated region fallthrough
CT: control target
= control target key end

     0   :  { %11 = vsyncpa [#allocation3], 0  ;;  %s284_s0 = inlined_call_operand.vmem [shape: f32[2,128], index: 0, kind: input, shape index: {}]   ;;  %s285_s1 = inlined_call_operand.vmem [shape: f32[2,128], index: 1, kind: input, shape index: {}]   ;;  %s286_s2 = inlined_call_operand.vmem [shape: f32[2,128], index: 2, kind: input, shape index: {}]   ;;  %s287_s3 = inlined_call_operand.vmem [shape: f32[128,4], index: 3, kind: input, shape index: {}]   ;;  %s288_s4 = inlined_call_operand.hbm [shape: f32[2,128], index: 4, kind: output, shape index: {0}]   ;;  %s289_s5 = inlined_call_operand.hbm [shape: f32[2,4], index: 5, kind: output, shape index: {1}]  }
   0x1   :  { %v71_v0 = vld [vmem:[%s287_s3 + $0x78] sm:$0xff]  ;;  %v70_v1 = vld [vmem:[%s287_s3 + $0x70] sm:$0xff]  ;;  %v69_v2 = vld [vmem:[%s287_s3 + $0x68] sm:$0xff] }
   0x2   :  { %72 = vmatpush.msra.mxu0 %v71_v0  ;;  %v68_v3 = vld [vmem:[%s287_s3 + $0x60] sm:$0xff]  ;;  %v67_v4 = vld [vmem:[%s287_s3 + $0x58] sm:$0xff] }
   0x3   :  { %v23_v5 = vld [vmem:[%s285_s1] sm:$0x3] }
   0x4   :  { %73 = vmatpush.msra.mxu0 %v70_v1 }
   0x6   :  { %74 = vmatpush.msra.mxu0 %v69_v2 }
   0x7   :  { %12 = vsyncpa [#allocation5], 0  ;;  %v24_v6 = vmax.f32 %v23_v5, -20.0  ;;  %v66_v7 = vld [vmem:[%s287_s3 + $0x50] sm:$0xff]  ;;  %v65_v9 = vld [vmem:[%s287_s3 + $0x48] sm:$0xff]  ;;  %s101_s6 = sshll.u32 %s288_s4, 4  ;;  %s102_s6 = int_to_ptr.hbm [resolvable:$true] %s101_s6 }
   0x8   :  { %75 = vmatpush.msra.mxu0 %v68_v3  ;;  %v64_v11 = vld [vmem:[%s287_s3 + $0x40] sm:$0xff]  ;;  %v63_v12 = vld [vmem:[%s287_s3 + $0x38] sm:$0xff]  ;;  %v62_v13 = vld [vmem:[%s287_s3 + $0x30] sm:$0xff]  ;;  %s190_s7 = smov [#allocation4]   ;;  %s112_s1 = sshll.u32 %s289_s5, 4  ;;  %vm92_vm1 = vcmask 25600   ;;  %s113_s1 = int_to_ptr.hbm [resolvable:$true] %s112_s1 }
   0x9   :  { %v25_v8 = vmin.f32 %v24_v6, 2.0  ;;  %v21_v14 = vld [vmem:[%s286_s2] sm:$0x3]  ;;  %v61_v15 = vld [vmem:[%s287_s3 + $0x28] sm:$0xff]  ;;  %v59_v20 = vld [vmem:[%s287_s3 + $0x18] sm:$0xff]  ;;  %s110_s8 = sshll.u32 %s190_s7, 4  ;;  %s111_s8 = int_to_ptr.vmem [resolvable:$true] %s110_s8 }
   0xa   :  { %76 = vmatpush.msra.mxu0 %v67_v4  ;;  %v22_v17 = vld [vmem:[%s284_s0] sm:$0x3]  ;;  %v58_v22 = vld [vmem:[%s287_s3 + $0x10] sm:$0xff]  ;;  %v57_v24 = vld [vmem:[%s287_s3 + $0x8] sm:$0xff]  ;;  %v30_v32 = vmul.f32 -0.5, %v21_v14 }
   0xb   :  { %v26_v10 = vmul.f32 1.442695, %v25_v8  ;;  %v60_v18 = vld [vmem:[%s287_s3 + $0x20] sm:$0xff] }
   0xc   :  { %77 = vmatpush.msra.mxu0 %v66_v7  ;;  %v56_v26 = vld [vmem:[%s287_s3] sm:$0xff]  ;;  %v31_v35 = vmul.f32 %v30_v32, %v21_v14  ;;  %s189_s3 = smov [#allocation2]  }
   0xd   :  { %129 = vpow2.f32 %v26_v10  ;;  %s99_s28 = sshll.u32 %s189_s3, 4  ;;  %s100_s28 = int_to_ptr.vmem [resolvable:$true] %s99_s28 }
   0xe   :  { %78 = vmatpush.msra.mxu0 %v65_v9  ;;  %v32_v40 = vsub.f32 %v31_v35, %v25_v8 }
  0x10   :  { %79 = vmatpush.msra.mxu0 %v64_v11  ;;  %v126_v44 = vadd.f32 -0.9189385, %v32_v40 }
  0x12   :  { %80 = vmatpush.msra.mxu0 %v63_v12 }
  0x13   :  { %v130_v16 = vpop.eup %129 }
  0x14   :  { %81 = vmatpush.msra.mxu0 %v62_v13  ;;  %v28_v19 = vmul.f32 %v130_v16, %v21_v14 }
  0x16   :  { %82 = vmatpush.msra.mxu0 %v61_v15  ;;  %v29_v21 = vadd.f32 %v28_v19, %v22_v17 }
  0x18   :  { %83 = vmatpush.msra.mxu0 %v60_v18  ;;  %v36_v23 = vmul.f32 -2.0, %v29_v21  ;;  %v35_v41 = vsub.f32 0.6931472, %v29_v21 }
  0x1a   :  { %84 = vmatpush.msra.mxu0 %v59_v20  ;;  %v38_v25 = vand.u32 2147483647, %v36_v23  ;;  %v37_v38 = vmax.f32 %v36_v23, 0.0 }
  0x1c   :  { %85 = vmatpush.msra.mxu0 %v58_v22  ;;  %v39_v27 = vsub.f32 0.0, %v38_v25 }
  0x1e   :  { %86 = vmatpush.msra.mxu0 %v57_v24  ;;  %v40_v28 = vmul.f32 1.442695, %v39_v27 }
  0x20   :  { %87 = vmatpush.msra.mxu0 %v56_v26  ;;  %131 = vpow2.f32 %v40_v28 }
  0x26   :  { %v132_v29 = vpop.eup %131 }
  0x27   :  { %v42_v30 = vadd.f32 1.0, %v132_v29  ;;  %v45_v31 = vmul.f32 -0.5, %v132_v29  ;;  %v48_v34 = vand.u32 2147483647, %v132_v29 }
  0x29   :  { %133 = vlog2.f32 %v42_v30  ;;  %v46_v33 = vadd.f32 1.0, %v45_v31  ;;  %vm49_vm0 = vcmp.lt.f32.partialorder %v48_v34, 0.0004427343 }
  0x2a   :  { %135 = vtanh.f32 %v29_v21 }
  0x2b   :  { %v47_v36 = vmul.f32 %v132_v29, %v46_v33 }
  0x2f   :  { %v134_v37 = vpop.eup %133 }
  0x30   :  { %v44_v39 = vmul.f32 0.6931472, %v134_v37  ;;  %v136_v48 = vpop.eup %135 }
  0x31   :  { %55 = vst [vmem:[#allocation2] sm:$0x3] %v136_v48 }
  0x32   :  { %v50_v42 = vsel %vm49_vm0, %v47_v36, %v44_v39  ;;  %104 = dma.vmem_to_hbm [thread:$0]  %s100_s28, 32, %s102_s6, [#allocation3]  }
  0x33   :  { %v51_v43 = vadd.f32 %v50_v42, %v37_v38 }
  0x35   :  { %v52_v45 = vsub.f32 %v35_v41, %v51_v43 }
  0x37   :  { %v53_v46 = vmul.f32 2.0, %v52_v45 }
  0x39   :  { %v54_v47 = vsub.f32 %v126_v44, %v53_v46 }
  0x3b   :  { %88 = vmatmul.f32.vlgmr.msra.gmra.mxu0 %v54_v47 }
  0xb8   :  { %v89_v49 = vpop.f32.mrf.mxu0 }
  0xb9   :  { %93 = vst.msk [vmem:[#allocation4] sm:$0x3] %vm92_vm1, %v89_v49 }
  0xba   :  { %115 = dma.vmem_to_hbm [thread:$0]  %s111_s8, 32, %s113_s1, [#allocation5]  }
  0xbb   :  { %185 = dma.done.wait [#allocation3], 32  }
  0xbc   :  { %186 = vsyncadd [#allocation3], 4294967264 }
  0xbd   :  { %187 = dma.done.wait [#allocation5], 32  }
  0xbe   :  { %188 = vsyncadd [#allocation5], 4294967264 }
  0xbf   :  { %124 = vsyncpa [#allocation3], 1 }
  0xc0   :  { %125 = vsyncpa [#allocation5], 1 }

</bundles_post_ra>
